<compile_context>
chip_gen: v7x
topology: tpu7x:2x2x1
jax: 0.10.0
libtpu: 0.0.40
codegen_flags: <defaults>
</compile_context>

<pallas_src>
import jax
import jax.numpy as jnp
import numpy as np
from jax.experimental import pallas as pl
from jax.experimental.pallas import tpu as pltpu

LEAKY_SLOPE = 0.01
BN_EPS = 1e-5


def _conv3x3_im2col(x, w_t_ref, mask_l, mask_r, flat_ref, patch_ref, W):
    """3x3 same-convolution as ONE im2col matmul, channels-first flat layout.

    x        : (C, P) f32 value, P = H*W, pixel index p = h*W + w (lane axis).
    w_t_ref  : (Cout, 9*C) ref, columns ordered (dy, dx, cin).
    mask_l/r : (1, P) f32, zero where a dx=0 / dx=2 tap would wrap across an image row.
    flat_ref : (C, P + 2*W + 2) VMEM scratch: one zero halo row above/below, flattened.
    patch_ref: (9*C, P) VMEM scratch holding the im2col patch matrix.
    returns  : (Cout, P) f32 (lane-dense).
    """
    C, P = x.shape
    halo = W + 1
    # Zero only the 1-row halo, then write the interior (no full zero-fill pass).
    flat_ref[:, 0:halo] = jnp.zeros((C, halo), jnp.float32)
    flat_ref[:, halo + P:P + 2 * W + 2] = jnp.zeros((C, halo), jnp.float32)
    flat_ref[:, halo:halo + P] = x
    # Tap (dy, dx) of the row-padded image == contiguous lane slice at offset dy*W + dx;
    # lanes that wrap across a row boundary are masked to zero (dx != 1 only).
    for k in range(9):
        dy, dx = k // 3, k % 3
        tap = flat_ref[:, dy * W + dx:dy * W + dx + P]
        if dx == 0:
            tap = tap * mask_l
        elif dx == 2:
            tap = tap * mask_r
        patch_ref[k * C:(k + 1) * C, :] = tap
    # Single K = 9*C matmul on the MXU, f32 accumulation, N = H*W lane-dense output.
    return jnp.dot(w_t_ref[...], patch_ref[...], preferred_element_type=jnp.float32)


def _store_moments(y, stats_ref):
    """One-pass per-channel sum and sum-of-squares partials for BatchNorm."""
    stats_ref[0, :, 0:1] = jnp.sum(y, axis=1, keepdims=True)
    stats_ref[0, :, 1:2] = jnp.sum(y * y, axis=1, keepdims=True)


def double_conv(x_nchw, params):
    """Forward of DoubleConv. Takes / returns NCHW (PyTorch layout).

    params = (w1, b1, gamma1, beta1, w2, b2, gamma2, beta2); w* are (3, 3, Cin, Cout) HWIO.
    Conv biases are accepted but unused: training-mode BatchNorm cancels them exactly.
    """
    w1, _b1, g1, be1, w2, _b2, g2, be2 = params
    x = x_nchw.astype(jnp.float32)
    N, Cin, H, W = x.shape
    Cout = w1.shape[-1]
    P = H * W
    count = N * P

    # Channels-first flat layout: free reshape from NCHW (no transpose, no HBM pad).
    x_cf = x.reshape(N, Cin, P)
    w1_t = w1.reshape(9 * Cin, Cout).T       # (Cout, 9*Cin)
    w2_t = w2.reshape(9 * Cout, Cout).T      # (Cout, 9*Cout)

    col = jnp.arange(P, dtype=jnp.int32) % W
    mask_l = (col != 0).astype(jnp.float32).reshape(1, P)
    mask_r = (col != W - 1).astype(jnp.float32).reshape(1, P)

    cparams = pltpu.CompilerParams(dimension_semantics=("parallel",))

    def per_image(c):
        return pl.BlockSpec((1, c, P), lambda i: (i, 0, 0))

    def replicated(shape):
        return pl.BlockSpec(shape, lambda i: (0, 0))

    stats_spec = pl.BlockSpec((1, Cout, 2), lambda i: (i, 0, 0))
    stats_shape = jax.ShapeDtypeStruct((N, Cout, 2), jnp.float32)
    act_shape = jax.ShapeDtypeStruct((N, Cout, P), jnp.float32)

    # ---------- pass 1: conv1 (bias-free) + per-image sum / sumsq partials ----------
    def conv1_kernel(x_ref, w_ref, ml_ref, mr_ref, y_ref, stats_ref, flat_ref, patch_ref):
        y = _conv3x3_im2col(x_ref[0], w_ref, ml_ref[...], mr_ref[...],
                            flat_ref, patch_ref, W)
        _store_moments(y, stats_ref)
        y_ref[0] = y

    y1, st1 = pl.pallas_call(
        conv1_kernel,
        grid=(N,),
        in_specs=[per_image(Cin), replicated((Cout, 9 * Cin)),
                  replicated((1, P)), replicated((1, P))],
        out_specs=(per_image(Cout), stats_spec),
        out_shape=(act_shape, stats_shape),
        scratch_shapes=[pltpu.VMEM((Cin, P + 2 * W + 2), jnp.float32),
                        pltpu.VMEM((9 * Cin, P), jnp.float32)],
        compiler_params=cparams,
    )(x_cf, w1_t, mask_l, mask_r)

    def bn_affine(stats, gamma, beta):
        s = jnp.sum(stats, axis=0)                       # (Cout, 2) global sums
        mean = s[:, 0] / count
        var = s[:, 1] / count - mean * mean              # biased variance (train mode)
        scale = gamma * jax.lax.rsqrt(var + BN_EPS)
        shift = beta - mean * scale
        return scale.reshape(Cout, 1), shift.reshape(Cout, 1)

    sc1, sh1 = bn_affine(st1, g1, be1)

    # ---------- pass 2: bn1 + leaky (folded affine) fused into conv2 + partials ----------
    def conv2_kernel(y1_ref, sc_ref, sh_ref, w_ref, ml_ref, mr_ref,
                     y_ref, stats_ref, flat_ref, patch_ref):
        a = y1_ref[0] * sc_ref[...] + sh_ref[...]
        a = jnp.where(a >= 0, a, LEAKY_SLOPE * a)
        y = _conv3x3_im2col(a, w_ref, ml_ref[...], mr_ref[...],
                            flat_ref, patch_ref, W)
        _store_moments(y, stats_ref)
        y_ref[0] = y

    y2, st2 = pl.pallas_call(
        conv2_kernel,
        grid=(N,),
        in_specs=[per_image(Cout), replicated((Cout, 1)), replicated((Cout, 1)),
                  replicated((Cout, 9 * Cout)), replicated((1, P)), replicated((1, P))],
        out_specs=(per_image(Cout), stats_spec),
        out_shape=(act_shape, stats_shape),
        scratch_shapes=[pltpu.VMEM((Cout, P + 2 * W + 2), jnp.float32),
                        pltpu.VMEM((9 * Cout, P), jnp.float32)],
        compiler_params=cparams,
    )(y1, sc1, sh1, w2_t, mask_l, mask_r)

    sc2, sh2 = bn_affine(st2, g2, be2)

    # ---------- pass 3: bn2 + leaky normalize (lane-dense elementwise) ----------
    def bn_act_kernel(y_ref, sc_ref, sh_ref, o_ref):
        a = y_ref[0] * sc_ref[...] + sh_ref[...]
        o_ref[0] = jnp.where(a >= 0, a, LEAKY_SLOPE * a)

    out_cf = pl.pallas_call(
        bn_act_kernel,
        grid=(N,),
        in_specs=[per_image(Cout), replicated((Cout, 1)), replicated((Cout, 1))],
        out_specs=per_image(Cout),
        out_shape=act_shape,
        compiler_params=cparams,
    )(y2, sc2, sh2)

    # TODO(synk): for very large H*W (deep UNet stages at 256x256+) add a second grid axis
    # over row strips with a 1-row halo so per-program blocks stay within v7x's 64 MiB VMEM.
    return out_cf.reshape(N, Cout, H, W)


def double_conv_ref(x_nchw, params):
    """Pure-JAX reference faithful to the PyTorch module (includes conv bias)."""
    w1, b1, g1, be1, w2, b2, g2, be2 = params

    def conv(x, w, b):
        y = jax.lax.conv_general_dilated(
            x, w, window_strides=(1, 1), padding=((1, 1), (1, 1)),
            dimension_numbers=('NCHW', 'HWIO', 'NCHW'))
        return y + b[None, :, None, None]

    def bn_leaky(y, g, be):
        mean = jnp.mean(y, axis=(0, 2, 3), keepdims=True)
        var = jnp.mean((y - mean) ** 2, axis=(0, 2, 3), keepdims=True)
        out = (y - mean) * jax.lax.rsqrt(var + BN_EPS)
        out = out * g[None, :, None, None] + be[None, :, None, None]
        return jnp.where(out >= 0, out, LEAKY_SLOPE * out)

    y = bn_leaky(conv(x_nchw, w1, b1), g1, be1)
    y = bn_leaky(conv(y, w2, b2), g2, be2)
    return y


if __name__ == "__main__":
    key = jax.random.PRNGKey(0)
    N, Cin, H, W = 2, 4, 16, 16
    Cout = 8

    ks = jax.random.split(key, 5)
    x = jax.random.normal(ks[0], (N, Cin, H, W), jnp.float32)

    # PyTorch-style init: conv W/b ~ U(-1/sqrt(fan_in), 1/sqrt(fan_in)); BN gamma=1, beta=0.
    lim1 = 1.0 / (Cin * 9) ** 0.5
    w1 = jax.random.uniform(ks[1], (3, 3, Cin, Cout), jnp.float32, -lim1, lim1)
    b1 = jax.random.uniform(ks[2], (Cout,), jnp.float32, -lim1, lim1)
    lim2 = 1.0 / (Cout * 9) ** 0.5
    w2 = jax.random.uniform(ks[3], (3, 3, Cout, Cout), jnp.float32, -lim2, lim2)
    b2 = jax.random.uniform(ks[4], (Cout,), jnp.float32, -lim2, lim2)
    g1 = jnp.ones((Cout,), jnp.float32); be1 = jnp.zeros((Cout,), jnp.float32)
    g2 = jnp.ones((Cout,), jnp.float32); be2 = jnp.zeros((Cout,), jnp.float32)
    params = (w1, b1, g1, be1, w2, b2, g2, be2)

    out = jax.block_until_ready(jax.jit(double_conv)(x, params))
    ref = jax.block_until_ready(double_conv_ref(x, params))

    assert out.shape == (N, Cout, H, W), out.shape
    np.testing.assert_allclose(np.asarray(out), np.asarray(ref), rtol=1e-4, atol=1e-4)
    print("KERNEL_OK")
</pallas_src>

<mosaic_0001>
module attributes {stable_mosaic.version = 11 : i64} {
  func.func @conv1_kernel(%arg0: i32, %arg1: memref<1x4x256xf32, #tpu.memory_space<vmem>>, %arg2: memref<8x36xf32, #tpu.memory_space<vmem>>, %arg3: memref<1x256xf32, #tpu.memory_space<vmem>>, %arg4: memref<1x256xf32, #tpu.memory_space<vmem>>, %arg5: memref<1x8x256xf32, #tpu.memory_space<vmem>>, %arg6: memref<1x8x2xf32, #tpu.memory_space<vmem>>, %arg7: memref<4x290xf32, #tpu.memory_space<vmem>>, %arg8: memref<36x256xf32, #tpu.memory_space<vmem>>) attributes {dimension_semantics = [#tpu.dimension_semantics<parallel>], iteration_bounds = array<i64: 2>, scalar_prefetch = 0 : i64, scratch_operands = 2 : i64, tpu.core_type = #tpu.core_type<tc>, window_params = [{transform_indices = @transform_0, window_bounds = array<i64: 1, 4, 256>}, {pipeline_mode = #tpu.pipeline_mode<synchronous>, transform_indices = @transform_1, window_bounds = array<i64: 8, 36>}, {pipeline_mode = #tpu.pipeline_mode<synchronous>, transform_indices = @transform_2, window_bounds = array<i64: 1, 256>}, {pipeline_mode = #tpu.pipeline_mode<synchronous>, transform_indices = @transform_3, window_bounds = array<i64: 1, 256>}, {transform_indices = @transform_4, window_bounds = array<i64: 1, 8, 256>}, {transform_indices = @transform_5, window_bounds = array<i64: 1, 8, 2>}]} {
    %c0 = arith.constant 0 : index
    %c0_0 = arith.constant 0 : index
    %c0_1 = arith.constant 0 : index
    %0 = vector.load %arg1[%c0, %c0_0, %c0_1] : memref<1x4x256xf32, #tpu.memory_space<vmem>>, vector<1x4x256xf32>
    %1 = vector.shape_cast %0 : vector<1x4x256xf32> to vector<4x256xf32>
    %c0_2 = arith.constant 0 : index
    %c0_3 = arith.constant 0 : index
    %2 = vector.load %arg3[%c0_2, %c0_3] : memref<1x256xf32, #tpu.memory_space<vmem>>, vector<1x256xf32>
    %c0_4 = arith.constant 0 : index
    %c0_5 = arith.constant 0 : index
    %3 = vector.load %arg4[%c0_4, %c0_5] : memref<1x256xf32, #tpu.memory_space<vmem>>, vector<1x256xf32>
    %cst = arith.constant 0.000000e+00 : f32
    %4 = vector.broadcast %cst : f32 to vector<4x17xf32>
    %c0_6 = arith.constant 0 : index
    %c0_7 = arith.constant 0 : index
    %5 = vector.load %arg7[%c0_6, %c0_7] : memref<4x290xf32, #tpu.memory_space<vmem>>, vector<4x17xf32>
    tpu.vector_store %arg7[%c0_6, %c0_7], %4 {strides = array<i32>} : memref<4x290xf32, #tpu.memory_space<vmem>>, vector<4x17xf32>,
    %cst_8 = arith.constant 0.000000e+00 : f32
    %6 = vector.broadcast %cst_8 : f32 to vector<4x17xf32>
    %c0_9 = arith.constant 0 : index
    %c273 = arith.constant 273 : index
    %7 = vector.load %arg7[%c0_9, %c273] : memref<4x290xf32, #tpu.memory_space<vmem>>, vector<4x17xf32>
    tpu.vector_store %arg7[%c0_9, %c273], %6 {strides = array<i32>} : memref<4x290xf32, #tpu.memory_space<vmem>>, vector<4x17xf32>,
    %c0_10 = arith.constant 0 : index
    %c17 = arith.constant 17 : index
    %8 = vector.load %arg7[%c0_10, %c17] : memref<4x290xf32, #tpu.memory_space<vmem>>, vector<4x256xf32>
    tpu.vector_store %arg7[%c0_10, %c17], %1 {strides = array<i32>} : memref<4x290xf32, #tpu.memory_space<vmem>>, vector<4x256xf32>,
    %c0_11 = arith.constant 0 : index
    %c0_12 = arith.constant 0 : index
    %9 = vector.load %arg7[%c0_11, %c0_12] : memref<4x290xf32, #tpu.memory_space<vmem>>, vector<4x256xf32>
    %10 = vector.broadcast %2 : vector<1x256xf32> to vector<4x256xf32>
    %11 = arith.mulf %9, %10 : vector<4x256xf32>
    %c0_13 = arith.constant 0 : index
    %c0_14 = arith.constant 0 : index
    %12 = vector.load %arg8[%c0_13, %c0_14] : memref<36x256xf32, #tpu.memory_space<vmem>>, vector<4x256xf32>
    tpu.vector_store %arg8[%c0_13, %c0_14], %11 {strides = array<i32>} : memref<36x256xf32, #tpu.memory_space<vmem>>, vector<4x256xf32>,
    %c0_15 = arith.constant 0 : index
    %c1 = arith.constant 1 : index
    %13 = vector.load %arg7[%c0_15, %c1] : memref<4x290xf32, #tpu.memory_space<vmem>>, vector<4x256xf32>
    %c4 = arith.constant 4 : index
    %c0_16 = arith.constant 0 : index
    %14 = vector.load %arg8[%c4, %c0_16] : memref<36x256xf32, #tpu.memory_space<vmem>>, vector<4x256xf32>
    tpu.vector_store %arg8[%c4, %c0_16], %13 {strides = array<i32>} : memref<36x256xf32, #tpu.memory_space<vmem>>, vector<4x256xf32>,
    %c0_17 = arith.constant 0 : index
    %c2 = arith.constant 2 : index
    %15 = vector.load %arg7[%c0_17, %c2] : memref<4x290xf32, #tpu.memory_space<vmem>>, vector<4x256xf32>
    %16 = vector.broadcast %3 : vector<1x256xf32> to vector<4x256xf32>
    %17 = arith.mulf %15, %16 : vector<4x256xf32>
    %c8 = arith.constant 8 : index
    %c0_18 = arith.constant 0 : index
    %18 = vector.load %arg8[%c8, %c0_18] : memref<36x256xf32, #tpu.memory_space<vmem>>, vector<4x256xf32>
    tpu.vector_store %arg8[%c8, %c0_18], %17 {strides = array<i32>} : memref<36x256xf32, #tpu.memory_space<vmem>>, vector<4x256xf32>,
    %c0_19 = arith.constant 0 : index
    %c16 = arith.constant 16 : index
    %19 = vector.load %arg7[%c0_19, %c16] : memref<4x290xf32, #tpu.memory_space<vmem>>, vector<4x256xf32>
    %20 = vector.broadcast %2 : vector<1x256xf32> to vector<4x256xf32>
    %21 = arith.mulf %19, %20 : vector<4x256xf32>
    %c12 = arith.constant 12 : index
    %c0_20 = arith.constant 0 : index
    %22 = vector.load %arg8[%c12, %c0_20] : memref<36x256xf32, #tpu.memory_space<vmem>>, vector<4x256xf32>
    tpu.vector_store %arg8[%c12, %c0_20], %21 {strides = array<i32>} : memref<36x256xf32, #tpu.memory_space<vmem>>, vector<4x256xf32>,
    %c0_21 = arith.constant 0 : index
    %c17_22 = arith.constant 17 : index
    %23 = vector.load %arg7[%c0_21, %c17_22] : memref<4x290xf32, #tpu.memory_space<vmem>>, vector<4x256xf32>
    %c16_23 = arith.constant 16 : index
    %c0_24 = arith.constant 0 : index
    %24 = vector.load %arg8[%c16_23, %c0_24] : memref<36x256xf32, #tpu.memory_space<vmem>>, vector<4x256xf32>
    tpu.vector_store %arg8[%c16_23, %c0_24], %23 {strides = array<i32>} : memref<36x256xf32, #tpu.memory_space<vmem>>, vector<4x256xf32>,
    %c0_25 = arith.constant 0 : index
    %c18 = arith.constant 18 : index
    %25 = vector.load %arg7[%c0_25, %c18] : memref<4x290xf32, #tpu.memory_space<vmem>>, vector<4x256xf32>
    %26 = vector.broadcast %3 : vector<1x256xf32> to vector<4x256xf32>
    %27 = arith.mulf %25, %26 : vector<4x256xf32>
    %c20 = arith.constant 20 : index
    %c0_26 = arith.constant 0 : index
    %28 = vector.load %arg8[%c20, %c0_26] : memref<36x256xf32, #tpu.memory_space<vmem>>, vector<4x256xf32>
    tpu.vector_store %arg8[%c20, %c0_26], %27 {strides = array<i32>} : memref<36x256xf32, #tpu.memory_space<vmem>>, vector<4x256xf32>,
    %c0_27 = arith.constant 0 : index
    %c32 = arith.constant 32 : index
    %29 = vector.load %arg7[%c0_27, %c32] : memref<4x290xf32, #tpu.memory_space<vmem>>, vector<4x256xf32>
    %30 = vector.broadcast %2 : vector<1x256xf32> to vector<4x256xf32>
    %31 = arith.mulf %29, %30 : vector<4x256xf32>
    %c24 = arith.constant 24 : index
    %c0_28 = arith.constant 0 : index
    %32 = vector.load %arg8[%c24, %c0_28] : memref<36x256xf32, #tpu.memory_space<vmem>>, vector<4x256xf32>
    tpu.vector_store %arg8[%c24, %c0_28], %31 {strides = array<i32>} : memref<36x256xf32, #tpu.memory_space<vmem>>, vector<4x256xf32>,
    %c0_29 = arith.constant 0 : index
    %c33 = arith.constant 33 : index
    %33 = vector.load %arg7[%c0_29, %c33] : memref<4x290xf32, #tpu.memory_space<vmem>>, vector<4x256xf32>
    %c28 = arith.constant 28 : index
    %c0_30 = arith.constant 0 : index
    %34 = vector.load %arg8[%c28, %c0_30] : memref<36x256xf32, #tpu.memory_space<vmem>>, vector<4x256xf32>
    tpu.vector_store %arg8[%c28, %c0_30], %33 {strides = array<i32>} : memref<36x256xf32, #tpu.memory_space<vmem>>, vector<4x256xf32>,
    %c0_31 = arith.constant 0 : index
    %c34 = arith.constant 34 : index
    %35 = vector.load %arg7[%c0_31, %c34] : memref<4x290xf32, #tpu.memory_space<vmem>>, vector<4x256xf32>
    %36 = vector.broadcast %3 : vector<1x256xf32> to vector<4x256xf32>
    %37 = arith.mulf %35, %36 : vector<4x256xf32>
    %c32_32 = arith.constant 32 : index
    %c0_33 = arith.constant 0 : index
    %38 = vector.load %arg8[%c32_32, %c0_33] : memref<36x256xf32, #tpu.memory_space<vmem>>, vector<4x256xf32>
    tpu.vector_store %arg8[%c32_32, %c0_33], %37 {strides = array<i32>} : memref<36x256xf32, #tpu.memory_space<vmem>>, vector<4x256xf32>,
    %c0_34 = arith.constant 0 : index
    %c0_35 = arith.constant 0 : index
    %39 = vector.load %arg2[%c0_34, %c0_35] : memref<8x36xf32, #tpu.memory_space<vmem>>, vector<8x36xf32>
    %c0_36 = arith.constant 0 : index
    %c0_37 = arith.constant 0 : index
    %40 = vector.load %arg8[%c0_36, %c0_37] : memref<36x256xf32, #tpu.memory_space<vmem>>, vector<36x256xf32>
    %cst_38 = arith.constant dense<0.000000e+00> : vector<8x256xf32>
    %41 = tpu.matmul %39, %40, %cst_38 {dimension_numbers = #tpu.dot_dimension_numbers<[1], [0], [0], [1], [0, 0, 1, 1], [], []>} : vector<8x36xf32>, vector<36x256xf32>, vector<8x256xf32> -> vector<8x256xf32>
    %cst_39 = arith.constant dense<0.000000e+00> : vector<8xf32>
    %42 = vector.multi_reduction <add>, %41, %cst_39 [1] : vector<8x256xf32> to vector<8xf32>
    %43 = vector.shape_cast %42 : vector<8xf32> to vector<8x1xf32>
    %c0_40 = arith.constant 0 : index
    %c0_41 = arith.constant 0 : index
    %c0_42 = arith.constant 0 : index
    %44 = vector.load %arg6[%c0_40, %c0_41, %c0_42] : memref<1x8x2xf32, #tpu.memory_space<vmem>>, vector<1x8x1xf32>
    %45 = vector.shape_cast %44 : vector<1x8x1xf32> to vector<8x1xf32>
    %46 = vector.shape_cast %43 : vector<8x1xf32> to vector<1x8x1xf32>
    tpu.vector_store %arg6[%c0_40, %c0_41, %c0_42], %46 {strides = array<i32>} : memref<1x8x2xf32, #tpu.memory_space<vmem>>, vector<1x8x1xf32>,
    %47 = arith.mulf %41, %41 : vector<8x256xf32>
    %cst_43 = arith.constant dense<0.000000e+00> : vector<8xf32>
    %48 = vector.multi_reduction <add>, %47, %cst_43 [1] : vector<8x256xf32> to vector<8xf32>
    %49 = vector.shape_cast %48 : vector<8xf32> to vector<8x1xf32>
    %c0_44 = arith.constant 0 : index
    %c0_45 = arith.constant 0 : index
    %c1_46 = arith.constant 1 : index
    %50 = vector.load %arg6[%c0_44, %c0_45, %c1_46] : memref<1x8x2xf32, #tpu.memory_space<vmem>>, vector<1x8x1xf32>
    %51 = vector.shape_cast %50 : vector<1x8x1xf32> to vector<8x1xf32>
    %52 = vector.shape_cast %49 : vector<8x1xf32> to vector<1x8x1xf32>
    tpu.vector_store %arg6[%c0_44, %c0_45, %c1_46], %52 {strides = array<i32>} : memref<1x8x2xf32, #tpu.memory_space<vmem>>, vector<1x8x1xf32>,
    %c0_47 = arith.constant 0 : index
    %c0_48 = arith.constant 0 : index
    %c0_49 = arith.constant 0 : index
    %53 = vector.load %arg5[%c0_47, %c0_48, %c0_49] : memref<1x8x256xf32, #tpu.memory_space<vmem>>, vector<1x8x256xf32>
    %54 = vector.shape_cast %53 : vector<1x8x256xf32> to vector<8x256xf32>
    %55 = vector.shape_cast %41 : vector<8x256xf32> to vector<1x8x256xf32>
    tpu.vector_store %arg5[%c0_47, %c0_48, %c0_49], %55 {strides = array<i32>} : memref<1x8x256xf32, #tpu.memory_space<vmem>>, vector<1x8x256xf32>,
    return
  }
  func.func @transform_0(%arg0: i32) -> (i32, i32, i32) {
    %c0_i32 = arith.constant 0 : i32
    %c0_i32_0 = arith.constant 0 : i32
    %c0_i32_1 = arith.constant 0 : i32
    return %arg0, %c0_i32, %c0_i32_0 : i32, i32, i32
  }
  func.func @transform_1(%arg0: i32) -> (i32, i32) {
    %c0_i32 = arith.constant 0 : i32
    %c0_i32_0 = arith.constant 0 : i32
    %c0_i32_1 = arith.constant 0 : i32
    return %c0_i32, %c0_i32_0 : i32, i32
  }
  func.func @transform_2(%arg0: i32) -> (i32, i32) {
    %c0_i32 = arith.constant 0 : i32
    %c0_i32_0 = arith.constant 0 : i32
    %c0_i32_1 = arith.constant 0 : i32
    return %c0_i32, %c0_i32_0 : i32, i32
  }
  func.func @transform_3(%arg0: i32) -> (i32, i32) {
    %c0_i32 = arith.constant 0 : i32
    %c0_i32_0 = arith.constant 0 : i32
    %c0_i32_1 = arith.constant 0 : i32
    return %c0_i32, %c0_i32_0 : i32, i32
  }
  func.func @transform_4(%arg0: i32) -> (i32, i32, i32) {
    %c0_i32 = arith.constant 0 : i32
    %c0_i32_0 = arith.constant 0 : i32
    %c0_i32_1 = arith.constant 0 : i32
    return %arg0, %c0_i32, %c0_i32_0 : i32, i32, i32
  }
  func.func @transform_5(%arg0: i32) -> (i32, i32, i32) {
    %c0_i32 = arith.constant 0 : i32
    %c0_i32_0 = arith.constant 0 : i32
    %c0_i32_1 = arith.constant 0 : i32
    return %arg0, %c0_i32, %c0_i32_0 : i32, i32, i32
  }
}

module attributes {stable_mosaic.version = 11 : i64} {
  func.func @conv2_kernel(%arg0: i32, %arg1: memref<1x8x256xf32, #tpu.memory_space<vmem>>, %arg2: memref<8x1xf32, #tpu.memory_space<vmem>>, %arg3: memref<8x1xf32, #tpu.memory_space<vmem>>, %arg4: memref<8x72xf32, #tpu.memory_space<vmem>>, %arg5: memref<1x256xf32, #tpu.memory_space<vmem>>, %arg6: memref<1x256xf32, #tpu.memory_space<vmem>>, %arg7: memref<1x8x256xf32, #tpu.memory_space<vmem>>, %arg8: memref<1x8x2xf32, #tpu.memory_space<vmem>>, %arg9: memref<8x290xf32, #tpu.memory_space<vmem>>, %arg10: memref<72x256xf32, #tpu.memory_space<vmem>>) attributes {dimension_semantics = [#tpu.dimension_semantics<parallel>], iteration_bounds = array<i64: 2>, scalar_prefetch = 0 : i64, scratch_operands = 2 : i64, tpu.core_type = #tpu.core_type<tc>, window_params = [{transform_indices = @transform_0, window_bounds = array<i64: 1, 8, 256>}, {pipeline_mode = #tpu.pipeline_mode<synchronous>, transform_indices = @transform_1, window_bounds = array<i64: 8, 1>}, {pipeline_mode = #tpu.pipeline_mode<synchronous>, transform_indices = @transform_2, window_bounds = array<i64: 8, 1>}, {pipeline_mode = #tpu.pipeline_mode<synchronous>, transform_indices = @transform_3, window_bounds = array<i64: 8, 72>}, {pipeline_mode = #tpu.pipeline_mode<synchronous>, transform_indices = @transform_4, window_bounds = array<i64: 1, 256>}, {pipeline_mode = #tpu.pipeline_mode<synchronous>, transform_indices = @transform_5, window_bounds = array<i64: 1, 256>}, {transform_indices = @transform_6, window_bounds = array<i64: 1, 8, 256>}, {transform_indices = @transform_7, window_bounds = array<i64: 1, 8, 2>}]} {
    %c0 = arith.constant 0 : index
    %c0_0 = arith.constant 0 : index
    %c0_1 = arith.constant 0 : index
    %0 = vector.load %arg1[%c0, %c0_0, %c0_1] : memref<1x8x256xf32, #tpu.memory_space<vmem>>, vector<1x8x256xf32>
    %1 = vector.shape_cast %0 : vector<1x8x256xf32> to vector<8x256xf32>
    %c0_2 = arith.constant 0 : index
    %c0_3 = arith.constant 0 : index
    %2 = vector.load %arg2[%c0_2, %c0_3] : memref<8x1xf32, #tpu.memory_space<vmem>>, vector<8x1xf32>
    %3 = vector.broadcast %2 : vector<8x1xf32> to vector<8x256xf32>
    %4 = arith.mulf %1, %3 : vector<8x256xf32>
    %c0_4 = arith.constant 0 : index
    %c0_5 = arith.constant 0 : index
    %5 = vector.load %arg3[%c0_4, %c0_5] : memref<8x1xf32, #tpu.memory_space<vmem>>, vector<8x1xf32>
    %6 = vector.broadcast %5 : vector<8x1xf32> to vector<8x256xf32>
    %7 = arith.addf %4, %6 : vector<8x256xf32>
    %cst = arith.constant 0.000000e+00 : f32
    %8 = vector.broadcast %cst : f32 to vector<8x256xf32>
    %9 = arith.cmpf oge, %7, %8 : vector<8x256xf32>
    %cst_6 = arith.constant 0.00999999977 : f32
    %10 = vector.broadcast %cst_6 : f32 to vector<8x256xf32>
    %11 = arith.mulf %10, %7 : vector<8x256xf32>
    %12 = arith.select %9, %7, %11 : vector<8x256xi1>, vector<8x256xf32>
    %c0_7 = arith.constant 0 : index
    %c0_8 = arith.constant 0 : index
    %13 = vector.load %arg5[%c0_7, %c0_8] : memref<1x256xf32, #tpu.memory_space<vmem>>, vector<1x256xf32>
    %c0_9 = arith.constant 0 : index
    %c0_10 = arith.constant 0 : index
    %14 = vector.load %arg6[%c0_9, %c0_10] : memref<1x256xf32, #tpu.memory_space<vmem>>, vector<1x256xf32>
    %cst_11 = arith.constant 0.000000e+00 : f32
    %15 = vector.broadcast %cst_11 : f32 to vector<8x17xf32>
    %c0_12 = arith.constant 0 : index
    %c0_13 = arith.constant 0 : index
    %16 = vector.load %arg9[%c0_12, %c0_13] : memref<8x290xf32, #tpu.memory_space<vmem>>, vector<8x17xf32>
    tpu.vector_store %arg9[%c0_12, %c0_13], %15 {strides = array<i32>} : memref<8x290xf32, #tpu.memory_space<vmem>>, vector<8x17xf32>,
    %cst_14 = arith.constant 0.000000e+00 : f32
    %17 = vector.broadcast %cst_14 : f32 to vector<8x17xf32>
    %c0_15 = arith.constant 0 : index
    %c273 = arith.constant 273 : index
    %18 = vector.load %arg9[%c0_15, %c273] : memref<8x290xf32, #tpu.memory_space<vmem>>, vector<8x17xf32>
    tpu.vector_store %arg9[%c0_15, %c273], %17 {strides = array<i32>} : memref<8x290xf32, #tpu.memory_space<vmem>>, vector<8x17xf32>,
    %c0_16 = arith.constant 0 : index
    %c17 = arith.constant 17 : index
    %19 = vector.load %arg9[%c0_16, %c17] : memref<8x290xf32, #tpu.memory_space<vmem>>, vector<8x256xf32>
    tpu.vector_store %arg9[%c0_16, %c17], %12 {strides = array<i32>} : memref<8x290xf32, #tpu.memory_space<vmem>>, vector<8x256xf32>,
    %c0_17 = arith.constant 0 : index
    %c0_18 = arith.constant 0 : index
    %20 = vector.load %arg9[%c0_17, %c0_18] : memref<8x290xf32, #tpu.memory_space<vmem>>, vector<8x256xf32>
    %21 = vector.broadcast %13 : vector<1x256xf32> to vector<8x256xf32>
    %22 = arith.mulf %20, %21 : vector<8x256xf32>
    %c0_19 = arith.constant 0 : index
    %c0_20 = arith.constant 0 : index
    %23 = vector.load %arg10[%c0_19, %c0_20] : memref<72x256xf32, #tpu.memory_space<vmem>>, vector<8x256xf32>
    tpu.vector_store %arg10[%c0_19, %c0_20], %22 {strides = array<i32>} : memref<72x256xf32, #tpu.memory_space<vmem>>, vector<8x256xf32>,
    %c0_21 = arith.constant 0 : index
    %c1 = arith.constant 1 : index
    %24 = vector.load %arg9[%c0_21, %c1] : memref<8x290xf32, #tpu.memory_space<vmem>>, vector<8x256xf32>
    %c8 = arith.constant 8 : index
    %c0_22 = arith.constant 0 : index
    %25 = vector.load %arg10[%c8, %c0_22] : memref<72x256xf32, #tpu.memory_space<vmem>>, vector<8x256xf32>
    tpu.vector_store %arg10[%c8, %c0_22], %24 {strides = array<i32>} : memref<72x256xf32, #tpu.memory_space<vmem>>, vector<8x256xf32>,
    %c0_23 = arith.constant 0 : index
    %c2 = arith.constant 2 : index
    %26 = vector.load %arg9[%c0_23, %c2] : memref<8x290xf32, #tpu.memory_space<vmem>>, vector<8x256xf32>
    %27 = vector.broadcast %14 : vector<1x256xf32> to vector<8x256xf32>
    %28 = arith.mulf %26, %27 : vector<8x256xf32>
    %c16 = arith.constant 16 : index
    %c0_24 = arith.constant 0 : index
    %29 = vector.load %arg10[%c16, %c0_24] : memref<72x256xf32, #tpu.memory_space<vmem>>, vector<8x256xf32>
    tpu.vector_store %arg10[%c16, %c0_24], %28 {strides = array<i32>} : memref<72x256xf32, #tpu.memory_space<vmem>>, vector<8x256xf32>,
    %c0_25 = arith.constant 0 : index
    %c16_26 = arith.constant 16 : index
    %30 = vector.load %arg9[%c0_25, %c16_26] : memref<8x290xf32, #tpu.memory_space<vmem>>, vector<8x256xf32>
    %31 = vector.broadcast %13 : vector<1x256xf32> to vector<8x256xf32>
    %32 = arith.mulf %30, %31 : vector<8x256xf32>
    %c24 = arith.constant 24 : index
    %c0_27 = arith.constant 0 : index
    %33 = vector.load %arg10[%c24, %c0_27] : memref<72x256xf32, #tpu.memory_space<vmem>>, vector<8x256xf32>
    tpu.vector_store %arg10[%c24, %c0_27], %32 {strides = array<i32>} : memref<72x256xf32, #tpu.memory_space<vmem>>, vector<8x256xf32>,
    %c0_28 = arith.constant 0 : index
    %c17_29 = arith.constant 17 : index
    %34 = vector.load %arg9[%c0_28, %c17_29] : memref<8x290xf32, #tpu.memory_space<vmem>>, vector<8x256xf32>
    %c32 = arith.constant 32 : index
    %c0_30 = arith.constant 0 : index
    %35 = vector.load %arg10[%c32, %c0_30] : memref<72x256xf32, #tpu.memory_space<vmem>>, vector<8x256xf32>
    tpu.vector_store %arg10[%c32, %c0_30], %34 {strides = array<i32>} : memref<72x256xf32, #tpu.memory_space<vmem>>, vector<8x256xf32>,
    %c0_31 = arith.constant 0 : index
    %c18 = arith.constant 18 : index
    %36 = vector.load %arg9[%c0_31, %c18] : memref<8x290xf32, #tpu.memory_space<vmem>>, vector<8x256xf32>
    %37 = vector.broadcast %14 : vector<1x256xf32> to vector<8x256xf32>
    %38 = arith.mulf %36, %37 : vector<8x256xf32>
    %c40 = arith.constant 40 : index
    %c0_32 = arith.constant 0 : index
    %39 = vector.load %arg10[%c40, %c0_32] : memref<72x256xf32, #tpu.memory_space<vmem>>, vector<8x256xf32>
    tpu.vector_store %arg10[%c40, %c0_32], %38 {strides = array<i32>} : memref<72x256xf32, #tpu.memory_space<vmem>>, vector<8x256xf32>,
    %c0_33 = arith.constant 0 : index
    %c32_34 = arith.constant 32 : index
    %40 = vector.load %arg9[%c0_33, %c32_34] : memref<8x290xf32, #tpu.memory_space<vmem>>, vector<8x256xf32>
    %41 = vector.broadcast %13 : vector<1x256xf32> to vector<8x256xf32>
    %42 = arith.mulf %40, %41 : vector<8x256xf32>
    %c48 = arith.constant 48 : index
    %c0_35 = arith.constant 0 : index
    %43 = vector.load %arg10[%c48, %c0_35] : memref<72x256xf32, #tpu.memory_space<vmem>>, vector<8x256xf32>
    tpu.vector_store %arg10[%c48, %c0_35], %42 {strides = array<i32>} : memref<72x256xf32, #tpu.memory_space<vmem>>, vector<8x256xf32>,
    %c0_36 = arith.constant 0 : index
    %c33 = arith.constant 33 : index
    %44 = vector.load %arg9[%c0_36, %c33] : memref<8x290xf32, #tpu.memory_space<vmem>>, vector<8x256xf32>
    %c56 = arith.constant 56 : index
    %c0_37 = arith.constant 0 : index
    %45 = vector.load %arg10[%c56, %c0_37] : memref<72x256xf32, #tpu.memory_space<vmem>>, vector<8x256xf32>
    tpu.vector_store %arg10[%c56, %c0_37], %44 {strides = array<i32>} : memref<72x256xf32, #tpu.memory_space<vmem>>, vector<8x256xf32>,
    %c0_38 = arith.constant 0 : index
    %c34 = arith.constant 34 : index
    %46 = vector.load %arg9[%c0_38, %c34] : memref<8x290xf32, #tpu.memory_space<vmem>>, vector<8x256xf32>
    %47 = vector.broadcast %14 : vector<1x256xf32> to vector<8x256xf32>
    %48 = arith.mulf %46, %47 : vector<8x256xf32>
    %c64 = arith.constant 64 : index
    %c0_39 = arith.constant 0 : index
    %49 = vector.load %arg10[%c64, %c0_39] : memref<72x256xf32, #tpu.memory_space<vmem>>, vector<8x256xf32>
    tpu.vector_store %arg10[%c64, %c0_39], %48 {strides = array<i32>} : memref<72x256xf32, #tpu.memory_space<vmem>>, vector<8x256xf32>,
    %c0_40 = arith.constant 0 : index
    %c0_41 = arith.constant 0 : index
    %50 = vector.load %arg4[%c0_40, %c0_41] : memref<8x72xf32, #tpu.memory_space<vmem>>, vector<8x72xf32>
    %c0_42 = arith.constant 0 : index
    %c0_43 = arith.constant 0 : index
    %51 = vector.load %arg10[%c0_42, %c0_43] : memref<72x256xf32, #tpu.memory_space<vmem>>, vector<72x256xf32>
    %cst_44 = arith.constant dense<0.000000e+00> : vector<8x256xf32>
    %52 = tpu.matmul %50, %51, %cst_44 {dimension_numbers = #tpu.dot_dimension_numbers<[1], [0], [0], [1], [0, 0, 1, 1], [], []>} : vector<8x72xf32>, vector<72x256xf32>, vector<8x256xf32> -> vector<8x256xf32>
    %cst_45 = arith.constant dense<0.000000e+00> : vector<8xf32>
    %53 = vector.multi_reduction <add>, %52, %cst_45 [1] : vector<8x256xf32> to vector<8xf32>
    %54 = vector.shape_cast %53 : vector<8xf32> to vector<8x1xf32>
    %c0_46 = arith.constant 0 : index
    %c0_47 = arith.constant 0 : index
    %c0_48 = arith.constant 0 : index
    %55 = vector.load %arg8[%c0_46, %c0_47, %c0_48] : memref<1x8x2xf32, #tpu.memory_space<vmem>>, vector<1x8x1xf32>
    %56 = vector.shape_cast %55 : vector<1x8x1xf32> to vector<8x1xf32>
    %57 = vector.shape_cast %54 : vector<8x1xf32> to vector<1x8x1xf32>
    tpu.vector_store %arg8[%c0_46, %c0_47, %c0_48], %57 {strides = array<i32>} : memref<1x8x2xf32, #tpu.memory_space<vmem>>, vector<1x8x1xf32>,
    %58 = arith.mulf %52, %52 : vector<8x256xf32>
    %cst_49 = arith.constant dense<0.000000e+00> : vector<8xf32>
    %59 = vector.multi_reduction <add>, %58, %cst_49 [1] : vector<8x256xf32> to vector<8xf32>
    %60 = vector.shape_cast %59 : vector<8xf32> to vector<8x1xf32>
    %c0_50 = arith.constant 0 : index
    %c0_51 = arith.constant 0 : index
    %c1_52 = arith.constant 1 : index
    %61 = vector.load %arg8[%c0_50, %c0_51, %c1_52] : memref<1x8x2xf32, #tpu.memory_space<vmem>>, vector<1x8x1xf32>
    %62 = vector.shape_cast %61 : vector<1x8x1xf32> to vector<8x1xf32>
    %63 = vector.shape_cast %60 : vector<8x1xf32> to vector<1x8x1xf32>
    tpu.vector_store %arg8[%c0_50, %c0_51, %c1_52], %63 {strides = array<i32>} : memref<1x8x2xf32, #tpu.memory_space<vmem>>, vector<1x8x1xf32>,
    %c0_53 = arith.constant 0 : index
    %c0_54 = arith.constant 0 : index
    %c0_55 = arith.constant 0 : index
    %64 = vector.load %arg7[%c0_53, %c0_54, %c0_55] : memref<1x8x256xf32, #tpu.memory_space<vmem>>, vector<1x8x256xf32>
    %65 = vector.shape_cast %64 : vector<1x8x256xf32> to vector<8x256xf32>
    %66 = vector.shape_cast %52 : vector<8x256xf32> to vector<1x8x256xf32>
    tpu.vector_store %arg7[%c0_53, %c0_54, %c0_55], %66 {strides = array<i32>} : memref<1x8x256xf32, #tpu.memory_space<vmem>>, vector<1x8x256xf32>,
    return
  }
  func.func @transform_0(%arg0: i32) -> (i32, i32, i32) {
    %c0_i32 = arith.constant 0 : i32
    %c0_i32_0 = arith.constant 0 : i32
    %c0_i32_1 = arith.constant 0 : i32
    return %arg0, %c0_i32, %c0_i32_0 : i32, i32, i32
  }
  func.func @transform_1(%arg0: i32) -> (i32, i32) {
    %c0_i32 = arith.constant 0 : i32
    %c0_i32_0 = arith.constant 0 : i32
    %c0_i32_1 = arith.constant 0 : i32
    return %c0_i32, %c0_i32_0 : i32, i32
  }
  func.func @transform_2(%arg0: i32) -> (i32, i32) {
    %c0_i32 = arith.constant 0 : i32
    %c0_i32_0 = arith.constant 0 : i32
    %c0_i32_1 = arith.constant 0 : i32
    return %c0_i32, %c0_i32_0 : i32, i32
  }
  func.func @transform_3(%arg0: i32) -> (i32, i32) {
    %c0_i32 = arith.constant 0 : i32
    %c0_i32_0 = arith.constant 0 : i32
    %c0_i32_1 = arith.constant 0 : i32
    return %c0_i32, %c0_i32_0 : i32, i32
  }
  func.func @transform_4(%arg0: i32) -> (i32, i32) {
    %c0_i32 = arith.constant 0 : i32
    %c0_i32_0 = arith.constant 0 : i32
    %c0_i32_1 = arith.constant 0 : i32
    return %c0_i32, %c0_i32_0 : i32, i32
  }
  func.func @transform_5(%arg0: i32) -> (i32, i32) {
    %c0_i32 = arith.constant 0 : i32
    %c0_i32_0 = arith.constant 0 : i32
    %c0_i32_1 = arith.constant 0 : i32
    return %c0_i32, %c0_i32_0 : i32, i32
  }
  func.func @transform_6(%arg0: i32) -> (i32, i32, i32) {
    %c0_i32 = arith.constant 0 : i32
    %c0_i32_0 = arith.constant 0 : i32
    %c0_i32_1 = arith.constant 0 : i32
    return %arg0, %c0_i32, %c0_i32_0 : i32, i32, i32
  }
  func.func @transform_7(%arg0: i32) -> (i32, i32, i32) {
    %c0_i32 = arith.constant 0 : i32
    %c0_i32_0 = arith.constant 0 : i32
    %c0_i32_1 = arith.constant 0 : i32
    return %arg0, %c0_i32, %c0_i32_0 : i32, i32, i32
  }
}

module attributes {stable_mosaic.version = 11 : i64} {
  func.func @bn_act_kernel(%arg0: i32, %arg1: memref<1x8x256xf32, #tpu.memory_space<vmem>>, %arg2: memref<8x1xf32, #tpu.memory_space<vmem>>, %arg3: memref<8x1xf32, #tpu.memory_space<vmem>>, %arg4: memref<1x8x256xf32, #tpu.memory_space<vmem>>) attributes {dimension_semantics = [#tpu.dimension_semantics<parallel>], iteration_bounds = array<i64: 2>, scalar_prefetch = 0 : i64, scratch_operands = 0 : i64, tpu.core_type = #tpu.core_type<tc>, window_params = [{transform_indices = @transform_0, window_bounds = array<i64: 1, 8, 256>}, {pipeline_mode = #tpu.pipeline_mode<synchronous>, transform_indices = @transform_1, window_bounds = array<i64: 8, 1>}, {pipeline_mode = #tpu.pipeline_mode<synchronous>, transform_indices = @transform_2, window_bounds = array<i64: 8, 1>}, {transform_indices = @transform_3, window_bounds = array<i64: 1, 8, 256>}]} {
    %c0 = arith.constant 0 : index
    %c0_0 = arith.constant 0 : index
    %c0_1 = arith.constant 0 : index
    %0 = vector.load %arg1[%c0, %c0_0, %c0_1] : memref<1x8x256xf32, #tpu.memory_space<vmem>>, vector<1x8x256xf32>
    %1 = vector.shape_cast %0 : vector<1x8x256xf32> to vector<8x256xf32>
    %c0_2 = arith.constant 0 : index
    %c0_3 = arith.constant 0 : index
    %2 = vector.load %arg2[%c0_2, %c0_3] : memref<8x1xf32, #tpu.memory_space<vmem>>, vector<8x1xf32>
    %3 = vector.broadcast %2 : vector<8x1xf32> to vector<8x256xf32>
    %4 = arith.mulf %1, %3 : vector<8x256xf32>
    %c0_4 = arith.constant 0 : index
    %c0_5 = arith.constant 0 : index
    %5 = vector.load %arg3[%c0_4, %c0_5] : memref<8x1xf32, #tpu.memory_space<vmem>>, vector<8x1xf32>
    %6 = vector.broadcast %5 : vector<8x1xf32> to vector<8x256xf32>
    %7 = arith.addf %4, %6 : vector<8x256xf32>
    %cst = arith.constant 0.000000e+00 : f32
    %8 = vector.broadcast %cst : f32 to vector<8x256xf32>
    %9 = arith.cmpf oge, %7, %8 : vector<8x256xf32>
    %cst_6 = arith.constant 0.00999999977 : f32
    %10 = vector.broadcast %cst_6 : f32 to vector<8x256xf32>
    %11 = arith.mulf %10, %7 : vector<8x256xf32>
    %12 = arith.select %9, %7, %11 : vector<8x256xi1>, vector<8x256xf32>
    %c0_7 = arith.constant 0 : index
    %c0_8 = arith.constant 0 : index
    %c0_9 = arith.constant 0 : index
    %13 = vector.load %arg4[%c0_7, %c0_8, %c0_9] : memref<1x8x256xf32, #tpu.memory_space<vmem>>, vector<1x8x256xf32>
    %14 = vector.shape_cast %13 : vector<1x8x256xf32> to vector<8x256xf32>
    %15 = vector.shape_cast %12 : vector<8x256xf32> to vector<1x8x256xf32>
    tpu.vector_store %arg4[%c0_7, %c0_8, %c0_9], %15 {strides = array<i32>} : memref<1x8x256xf32, #tpu.memory_space<vmem>>, vector<1x8x256xf32>,
    return
  }
  func.func @transform_0(%arg0: i32) -> (i32, i32, i32) {
    %c0_i32 = arith.constant 0 : i32
    %c0_i32_0 = arith.constant 0 : i32
    %c0_i32_1 = arith.constant 0 : i32
    return %arg0, %c0_i32, %c0_i32_0 : i32, i32, i32
  }
  func.func @transform_1(%arg0: i32) -> (i32, i32) {
    %c0_i32 = arith.constant 0 : i32
    %c0_i32_0 = arith.constant 0 : i32
    %c0_i32_1 = arith.constant 0 : i32
    return %c0_i32, %c0_i32_0 : i32, i32
  }
  func.func @transform_2(%arg0: i32) -> (i32, i32) {
    %c0_i32 = arith.constant 0 : i32
    %c0_i32_0 = arith.constant 0 : i32
    %c0_i32_1 = arith.constant 0 : i32
    return %c0_i32, %c0_i32_0 : i32, i32
  }
  func.func @transform_3(%arg0: i32) -> (i32, i32, i32) {
    %c0_i32 = arith.constant 0 : i32
    %c0_i32_0 = arith.constant 0 : i32
    %c0_i32_1 = arith.constant 0 : i32
    return %arg0, %c0_i32, %c0_i32_0 : i32, i32, i32
  }
}

</mosaic_0001>

<bundles_post_ra>
// kernel: double_conv.5
= control target key start
LH: loop header
LB: loop body
LE: loop exit
PB: predicated region body
PF: predicated region fallthrough
CT: control target
= control target key end

     0   :  { %s304_s12 = smov 0   ;;  %s327_s0 = inlined_call_operand.vmem [shape: f32[2,8,256], index: 0, kind: input, shape index: {}]   ;;  %s328_s1 = inlined_call_operand.vmem [shape: f32[8,1], index: 1, kind: input, shape index: {}]   ;;  %s329_s2 = inlined_call_operand.vmem [shape: f32[8,1], index: 2, kind: input, shape index: {}]   ;;  %s330_s3 = inlined_call_operand.vmem [shape: f32[2,8,256], index: 3, kind: output, shape index: {}]  }
   0x1 LB: > { %s252_s13 = sadd.s32 4294967295, %s281_s12   ;;  %p256_p0 = scmp.ge.s32.totalorder %s281_s12, 1  ;;  %s281_s12 = sphi %s304_s12, %s13_s12  }
   0x2   : > { %p137_p1 = scmp.lt.s32.totalorder %s281_s12, 3 }
   0x4   : > { %p138_p2 = pnand %p256_p0, %p137_p1 }
   0x5   : > { %v173_v0 = vld [vmem:[%s328_s1] sm:$0xff] (!%p138_p2)  ;;  %v283_v1 = vmov (!%p138_p2), 0   ;;  %p161_p3 = scmp.lt.s32.totalorder (!%p138_p2), %s252_s13, 1 }
   0x6   : > { %141 = sbr.rel (%p138_p2) target bundleno = 145 (0x91), region = 32  ;;  %274 = vset.pattern.permute.xlu0 (!%p138_p2), %v283_v1  ;;  %v181_v2 = vld [vmem:[%s329_s2] sm:$0xff] (!%p138_p2) }
   0x7   : > { %176 = vperm.xlu0 (!%p138_p2), %274, %v173_v0  }
   0xb   : > { %184 = vperm.xlu0 (!%p138_p2), %274, %v181_v2  }
   0xd   : > { %s332_s13 = smov (!%p161_p3, %s252_s13), 1 }
   0xe   : > { %s263_s18 = sshll.u32 %s332_s13, 4 }
   0xf   : > { %s165_s21 = scalar_lea.vmem %s327_s0, %s263_s18  ;;  %s170_s24 = scalar_lea.vmem %s330_s3, %s263_s18 }
  0x10   : > { %v171_v4 = vld [vmem:[%s165_s21] sm:$0xff]  ;;  %v172_v5 = vld [vmem:[%s165_s21 + $0x8] sm:$0xff] }
  0x86   : > { %v177_v3 = vpop.permute.xlu0 %176 }
  0x87   : > { %v179_v6 = vmul.f32 %v177_v3, %v171_v4  ;;  %v180_v7 = vmul.f32 %v177_v3, %v172_v5 }
  0x8a   : > { %v185_v8 = vpop.permute.xlu0 %184 }
  0x8b   : > { %v187_v9 = vadd.f32 %v185_v8, %v179_v6  ;;  %v188_v10 = vadd.f32 %v185_v8, %v180_v7 }
  0x8d   : > { %vm189_vm0 = vcmp.ge.f32.partialorder %v187_v9, 0.0  ;;  %vm190_vm1 = vcmp.ge.f32.partialorder %v188_v10, 0.0  ;;  %v191_v11 = vmul.f32 0.01, %v187_v9  ;;  %v192_v12 = vmul.f32 0.01, %v188_v10 }
  0x8f   : > { %v193_v13 = vsel %vm189_vm0, %v187_v9, %v191_v11  ;;  %v194_v14 = vsel %vm190_vm1, %v188_v10, %v192_v12 }
  0x90   : > { %195 = vst [vmem:[%s170_s24] sm:$0xff] %v193_v13  ;;  %196 = vst [vmem:[%s170_s24 + $0x8] sm:$0xff] %v194_v14 }
  0x91 PF: > { %s13_s12 = sadd.s32 1, %s281_s12  }
  0x92   : > { %p10_p4 = scmp.ge.s32.totalorder %s13_s12, 4  }
  0x94   :  { %12 = sbr.rel (!%p10_p4) target bundleno = 1 (0x1), region = 62 }

// kernel: double_conv.4
= control target key start
LH: loop header
LB: loop body
LE: loop exit
PB: predicated region body
PF: predicated region fallthrough
CT: control target
= control target key end

     0   :  { %s921_s24 = smov 0   ;;  %s1015_s0 = inlined_call_operand.vmem [shape: f32[2,8,256], index: 0, kind: input, shape index: {}]   ;;  %s1016_s1 = inlined_call_operand.vmem [shape: f32[8,1], index: 1, kind: input, shape index: {}]   ;;  %s1017_s2 = inlined_call_operand.vmem [shape: f32[8,1], index: 2, kind: input, shape index: {}]   ;;  %s1018_s3 = inlined_call_operand.vmem [shape: f32[8,72], index: 3, kind: input, shape index: {}]   ;;  %s1019_s4 = inlined_call_operand.vmem [shape: f32[1,256], index: 4, kind: input, shape index: {}]   ;;  %s1020_s5 = inlined_call_operand.vmem [shape: f32[1,256], index: 5, kind: input, shape index: {}]   ;;  %s1021_s6 = inlined_call_operand.vmem [shape: f32[2,8,256], index: 6, kind: output, shape index: {0}]   ;;  %s1022_s7 = inlined_call_operand.vmem [shape: f32[2,8,2], index: 7, kind: output, shape index: {1}]  }
   0x1 LB: > { %s766_s25 = sadd.s32 4294967295, %s863_s24   ;;  %p770_p0 = scmp.ge.s32.totalorder %s863_s24, 1  ;;  %s863_s24 = sphi %s921_s24, %s18_s24  }
   0x2   : > { %p240_p1 = scmp.lt.s32.totalorder %s863_s24, 3 }
   0x4   : > { %p241_p2 = pnand %p770_p0, %p240_p1 }
   0x5   : > { %v292_v0 = vld [vmem:[%s1016_s1] sm:$0xff] (!%p241_p2)  ;;  %v337_v1 = vlaneseq (!%p241_p2)  ;;  %v865_v2 = vmov (!%p241_p2), 0   ;;  %s866_s11 = smov (!%p241_p2), 2   ;;  %s867_s12 = smov (!%p241_p2), 16   ;;  %vm316_vm0 = vcmask (!%p241_p2), 138240   ;;  %v871_v13 = vmov (!%p241_p2), 0.0  }
   0x6   : > { %244 = sbr.rel (%p241_p2) target bundleno = 779 (0x30b), region = 44  ;;  %821 = vset.pattern.permute.xlu0 (!%p241_p2), %v865_v2  ;;  %v300_v4 = vld [vmem:[%s1017_s2] sm:$0xff] (!%p241_p2)  ;;  %s868_s13 = smov (!%p241_p2), 18   ;;  %317 = vst.msk [vmem:[#allocation2] sm:$0xff] (!%p241_p2), %vm316_vm0, %v871_v13  ;;  %659 = vmatprep.mubr.f32.mxu0 (!%p241_p2), %v871_v13  ;;  %vm318_vm1 = vcmask (!%p241_p2), 277640   ;;  %vm330_vm4 = vcmask (!%p241_p2), 1047688  }
   0x7   : > { %295 = vperm.xlu0 (!%p241_p2), %821, %v292_v0   ;;  %v338_v3 = vshrl.u32 (!%p241_p2), %v337_v1, 7  ;;  %v315_v5 = vld [vmem:[%s1020_s5] sm:$0x3] (!%p241_p2)  ;;  %s869_s14 = smov (!%p241_p2), 32   ;;  %s870_s15 = smov (!%p241_p2), 34   ;;  %319 = vst.msk [vmem:[#allocation2 + $0x10] sm:$0xff] (!%p241_p2), %vm318_vm1, %v871_v13 }
   0x8   : > { %v314_v8 = vld [vmem:[%s1019_s4] sm:$0x3] (!%p241_p2)  ;;  %p276_p3 = scmp.lt.s32.totalorder (!%p241_p2), %s766_s25, 1  ;;  %s872_s20 = smov (!%p241_p2), 17   ;;  %vm417_vm5 = vcmask (!%p241_p2), 130048   ;;  %vm467_vm6 = vcmask (!%p241_p2), 146432  }
   0x9   : > { %v339_v6 = vsub.s32 (!%p241_p2), 0, %v338_v3  ;;  %v343_v10 = vsub.s32 (!%p241_p2), 1, %v338_v3  ;;  %s873_s21 = smov (!%p241_p2), 111   ;;  %s874_s22 = smov (!%p241_p2), 127   ;;  %vm386_vm7 = vcmask (!%p241_p2), 15360   ;;  %vm498_vm8 = vcmask (!%p241_p2), 261120  }
   0xa   : > { %s875_s23 = smov (!%p241_p2), 112   ;;  %s876_s26 = smov (!%p241_p2), 110   ;;  %vm548_vm9 = vcmask (!%p241_p2), 277504   ;;  %vm363_vm10 = vcmask (!%p241_p2), 1039360   ;;  %vm434_vm11 = vcmask (!%p241_p2), 916480   ;;  %vm403_vm12 = vcmask (!%p241_p2), 1031168  }
   0xb   : > { %303 = vperm.xlu0 (!%p241_p2), %821, %v300_v4   ;;  %v377_v7 = vrot.slane (!%p241_p2), %v315_v5, %v339_v6  ;;  %v942_v9 = vrot.slane (!%p241_p2), %v314_v8, %v339_v6  ;;  %v381_v11 = vrot.slane (!%p241_p2), %v315_v5, %v343_v10  ;;  %v947_v12 = vrot.slane (!%p241_p2), %v314_v8, %v343_v10  ;;  %s877_s27 = smov (!%p241_p2), 126   ;;  %s878_s28 = smov (!%p241_p2), 95  }
   0xc   : > { %s879_s29 = smov (!%p241_p2), 96   ;;  %s880_s30 = smov (!%p241_p2), 94   ;;  %vm484_vm13 = vcmask (!%p241_p2), 900096   ;;  %vm453_vm14 = vcmask (!%p241_p2), 908288   ;;  %vm534_vm15 = vcmask (!%p241_p2), 777216   ;;  %vm565_vm1 = vcmask (!%p241_p2), 769024  }
   0xd   : > { %s1024_s25 = smov (!%p276_p3, %s766_s25), 1 }
   0xe   : > { %s779_s16 = sshll.u32 %s1024_s25, 4 }
   0xf   : > { %382 = vrot.lane.b32.xlu0 %v377_v7, %s866_s11  ;;  %s280_s19 = scalar_lea.vmem %s1015_s0, %s779_s16 }
  0x10   : > { %v290_v15 = vld [vmem:[%s280_s19] sm:$0xff]  ;;  %v291_v16 = vld [vmem:[%s280_s19 + $0x8] sm:$0xff] }
  0x13   : > { %413 = vrot.lane.b32.xlu0 %v942_v9, %s867_s12 }
  0x17   : > { %463 = vrot.lane.b32.xlu0 %v377_v7, %s868_s13 }
  0x1b   : > { %494 = vrot.lane.b32.xlu0 %v942_v9, %s869_s14 }
  0x1f   : > { %544 = vrot.lane.b32.xlu0 %v377_v7, %s870_s15 }
  0x86   : > { %v296_v14 = vpop.permute.xlu0 %295 }
  0x87   : > { %v298_v17 = vmul.f32 %v296_v14, %v290_v15  ;;  %v299_v18 = vmul.f32 %v296_v14, %v291_v16 }
  0x8a   : > { %v304_v19 = vpop.permute.xlu0 %303 }
  0x8b   : > { %v306_v20 = vadd.f32 %v304_v19, %v298_v17  ;;  %v307_v21 = vadd.f32 %v304_v19, %v299_v18 }
  0x8d   : > { %vm308_vm2 = vcmp.ge.f32.partialorder %v306_v20, 0.0  ;;  %v310_v22 = vmul.f32 0.01, %v306_v20  ;;  %v311_v24 = vmul.f32 0.01, %v307_v21  ;;  %vm309_vm3 = vcmp.ge.f32.partialorder %v307_v21, 0.0 }
  0x8e   : > { %v383_v27 = vpop.permute.xlu0 %382 }
  0x8f   : > { %v312_v23 = vsel %vm308_vm2, %v306_v20, %v310_v22  ;;  %v313_v25 = vsel %vm309_vm3, %v307_v21, %v311_v24  ;;  %vm591_vm2 = vcmask 588800   ;;  %vm669_vm3 = vcmask 7168  }
  0x90   : > { %322 = vrot.lane.b32.xlu1 %v312_v23, %s872_s20 }
  0x92   : > { %v414_v30 = vpop.permute.xlu0 %413 }
  0x94   : > { %324 = vrot.lane.b32.xlu1 %v313_v25, %s872_s20 }
  0x96   : > { %v464_v38 = vpop.permute.xlu0 %463 }
  0x98   : > { %384 = vrot.lane.b32.xlu1 %v381_v11, %s866_s11 }
  0x9a   : > { %v495_v53 = vpop.permute.xlu0 %494 }
  0x9c   : > { %415 = vrot.lane.b32.xlu1 %v947_v12, %s867_s12  ;;  %s285_s12 = scalar_lea.vmem %s1021_s6, %s779_s16 }
  0x9e   : > { %v545_v60 = vpop.permute.xlu0 %544 }
  0xa0   : > { %465 = vrot.lane.b32.xlu1 %v381_v11, %s868_s13  ;;  %s775_s13 = sshll.u32 %s1024_s25, 3 }
  0xa1   : > { %s289_s17 = scalar_lea.vmem %s1022_s7, %s775_s13 }
  0xa4   : > { %496 = vrot.lane.b32.xlu1 %v947_v12, %s869_s14 }
  0xa8   : > { %546 = vrot.lane.b32.xlu1 %v381_v11, %s870_s15 }
 0x102   : > { %v323_v26 = vpop.permute.xlu1 %322 }
 0x103   : > { %331 = vst.msk [vmem:[#allocation2] sm:$0xff] %vm330_vm4, %v323_v26  ;;  %vm676_vm4 = vcmask 15368  }
 0x106   : > { %v325_v28 = vpop.permute.xlu1 %324 }
 0x107   : > { %v973_v29 = vsel %vm316_vm0, %v323_v26, %v325_v28  ;;  %333 = vst.msk [vmem:[#allocation2 + $0x10] sm:$0xff] %vm316_vm0, %v325_v28  ;;  %vm515_vm0 = vcmask 785408  }
 0x108   : > { %v348_v10 = vmul.f32 %v947_v12, %v973_v29 }
 0x10a   : > { %v976_v31 = vld [vmem:[#allocation2] sm:$0xff]  ;;  %v385_v32 = vpop.permute.xlu1 %384 }
 0x10b   : > { %447 = vrot.lane.b32.xlu0 %v976_v31, %s873_s21  ;;  %357 = vrot.lane.b32.xlu1 %v976_v31, %s874_s22  ;;  %v422_v33 = vmul.f32 %v976_v31, %v414_v30  ;;  %v472_v41 = vmul.f32 %v976_v31, %v464_v38  ;;  %v387_v47 = vsel %vm386_vm7, %v383_v27, %v385_v32 }
 0x10c   : > { %v391_v49 = vmul.f32 %v976_v31, %v383_v27  ;;  %v392_v50 = vmul.f32 %v387_v47, %v973_v29  ;;  %v503_v56 = vmul.f32 %v495_v53, %v976_v31  ;;  %v553_v1 = vmul.f32 %v545_v60, %v976_v31 }
 0x10d   : > { %v347_v11 = vmul.f32 %v976_v31, %v942_v9 }
 0x10e   : > { %v372_v34 = vld [vmem:[#allocation2 + $0x10] sm:$0xff]  ;;  %v416_v35 = vpop.permute.xlu1 %415 }
 0x10f   : > { %v418_v36 = vsel %vm417_vm5, %v414_v30, %v416_v35  ;;  %428 = vrot.lane.b32.xlu1 %v422_v33, %s875_s23  ;;  %v822_v37 = vpack.i.bf16 %v372_v34, %v973_v29  ;;  %v424_v40 = vmul.f32 %v416_v35, %v372_v34  ;;  %v393_v48 = vmul.f32 %v385_v32, %v372_v34 }
 0x110   : > { %v423_v39 = vmul.f32 %v418_v36, %v973_v29 }
 0x111   : > { %823 = vrot.lane.b32.xlu0 %v822_v37, %s874_s22  ;;  %v832_v54 = vpack.i.bf16 %v393_v48, %v392_v50 }
 0x112   : > { %v466_v42 = vpop.permute.xlu1 %465  ;;  %v837_v44 = vpack.i.bf16 %v424_v40, %v423_v39 }
 0x113   : > { %v468_v43 = vsel %vm467_vm6, %v464_v38, %v466_v42  ;;  %478 = vrot.lane.b32.xlu1 %v472_v41, %s876_s26  ;;  %v474_v46 = vmul.f32 %v466_v42, %v372_v34 }
 0x114   : > { %v473_v45 = vmul.f32 %v468_v43, %v973_v29 }
 0x115   : > { %828 = vrot.lane.b32.xlu0 %v822_v37, %s873_s21 }
 0x116   : > { %v842_v51 = vpack.i.bf16 %v474_v46, %v473_v45  ;;  %v497_v52 = vpop.permute.xlu1 %496 }
 0x117   : > { %838 = vrot.lane.b32.xlu1 %v837_v44, %s875_s23  ;;  %v499_v55 = vsel %vm498_vm8, %v495_v53, %v497_v52  ;;  %v505_v58 = vmul.f32 %v497_v52, %v372_v34 }
 0x118   : > { %v504_v57 = vmul.f32 %v499_v55, %v973_v29 }
 0x119   : > { %397 = vrot.lane.b32.xlu0 %v391_v49, %s877_s27 }
 0x11a   : > { %v547_v59 = vpop.permute.xlu1 %546  ;;  %v852_v61 = vpack.i.bf16 %v505_v58, %v504_v57 }
 0x11b   : > { %843 = vrot.lane.b32.xlu1 %v842_v51, %s876_s26  ;;  %v549_v62 = vsel %vm548_vm9, %v545_v60, %v547_v59  ;;  %v555_v63 = vmul.f32 %v547_v59, %v372_v34  ;;  %v572_v59 = vld [vmem:[%s1018_s3] sm:$0xff] }
 0x11c   : > { %v554_v0 = vmul.f32 %v549_v62, %v973_v29 }
 0x11d   : > { %833 = vrot.lane.b32.xlu0 %v832_v54, %s877_s27 }
 0x11f   : > { %848 = vrot.lane.b32.xlu1 %v822_v37, %s878_s28 }
 0x121   : > { %509 = vrot.lane.b32.xlu0 %v503_v56, %s879_s29 }
 0x123   : > { %528 = vrot.lane.b32.xlu1 %v976_v31, %s878_s28 }
 0x125   : > { %853 = vrot.lane.b32.xlu0 %v852_v61, %s879_s29 }
 0x127   : > { %563 = vrot.lane.b32.xlu1 %v555_v63, %s880_s30 }
 0x129   : > { %561 = vrot.lane.b32.xlu0 %v554_v0, %s880_s30 }
 0x12d   : > { %559 = vrot.lane.b32.xlu0 %v553_v1, %s880_s30 }
 0x17d   : > { %v358_v2 = vpop.permute.xlu1 %357  ;;  %v448_v3 = vpop.permute.xlu0 %447 }
 0x181   : > { %v429_v4 = vpop.permute.xlu1 %428 }
 0x183   : > { %v824_v5 = vpop.permute.xlu0 %823 }
 0x184   : > { %v826_v6 = vunpack.i.h.bf16 %v824_v5  ;;  %v825_v7 = vunpack.i.l.bf16 %v824_v5 }
 0x185   : > { %v479_v8 = vpop.permute.xlu1 %478 }
 0x186   : > { %v365_v13 = vsel %vm363_vm10, %v825_v7, %v826_v6  ;;  %v364_v14 = vsel %vm363_vm10, %v358_v2, %v825_v7 }
 0x187   : > { %v829_v15 = vpop.permute.xlu0 %828  ;;  %v781_v16 = vpack.c.bf16 %v365_v13, %v348_v10  ;;  %v783_v17 = vpack.c.bf16 %v364_v14, %v347_v11 }
 0x188   : > { %v831_v12 = vunpack.i.h.bf16 %v829_v15  ;;  %v830_v9 = vunpack.i.l.bf16 %v829_v15 }
 0x189   : > { %v839_v18 = vpop.permute.xlu1 %838  ;;  %782 = vmatprep.subr.bf16.mxu0 %v781_v16 }
 0x18a   : > { %784 = vmatpush1.bf16.msra.mxu0 %v783_v17  ;;  %v841_v20 = vunpack.i.h.bf16 %v839_v18  ;;  %v840_v21 = vunpack.i.l.bf16 %v839_v18  ;;  %v455_v37 = vsel %vm453_vm14, %v830_v9, %v831_v12  ;;  %v454_v44 = vsel %vm453_vm14, %v448_v3, %v830_v9 }
 0x18b   : > { %v398_v19 = vpop.permute.xlu0 %397 }
 0x18c   : > { %v436_v29 = vsel %vm434_vm11, %v840_v21, %v841_v20  ;;  %v435_v32 = vsel %vm434_vm11, %v429_v4, %v840_v21 }
 0x18d   : > { %v844_v22 = vpop.permute.xlu1 %843 }
 0x18e   : > { %v846_v23 = vunpack.i.h.bf16 %v844_v22  ;;  %v845_v24 = vunpack.i.l.bf16 %v844_v22 }
 0x18f   : > { %v834_v25 = vpop.permute.xlu0 %833 }
 0x190   : > { %v836_v26 = vunpack.i.h.bf16 %v834_v25  ;;  %v835_v27 = vunpack.i.l.bf16 %v834_v25  ;;  %v486_v33 = vsel %vm484_vm13, %v845_v24, %v846_v23  ;;  %v485_v39 = vsel %vm484_vm13, %v479_v8, %v845_v24 }
 0x191   : > { %v849_v28 = vpop.permute.xlu1 %848  ;;  %v789_v38 = vpack.c.bf16 %v486_v33, %v455_v37  ;;  %v791_v47 = vpack.c.bf16 %v485_v39, %v454_v44 }
 0x192   : > { %v405_v30 = vsel %vm403_vm12, %v835_v27, %v836_v26  ;;  %v404_v31 = vsel %vm403_vm12, %v398_v19, %v835_v27  ;;  %v851_v40 = vunpack.i.h.bf16 %v849_v28  ;;  %v850_v41 = vunpack.i.l.bf16 %v849_v28 }
 0x193   : > { %v510_v34 = vpop.permute.xlu0 %509  ;;  %v785_v35 = vpack.c.bf16 %v436_v29, %v405_v30  ;;  %v787_v36 = vpack.c.bf16 %v435_v32, %v404_v31 }
 0x194   : > { %v536_v50 = vsel %vm534_vm15, %v850_v41, %v851_v40 }
 0x195   : > { %786 = vmatprep.subr.bf16.mxu0 %v785_v35  ;;  %v529_v42 = vpop.permute.xlu1 %528 }
 0x196   : > { %788 = vmatpush1.bf16.msra.mxu0 %v787_v36  ;;  %v535_v48 = vsel %vm534_vm15, %v529_v42, %v850_v41 }
 0x197   : > { %v854_v43 = vpop.permute.xlu0 %853  ;;  %790 = vmatprep.subr.bf16.mxu0 %v789_v38 }
 0x198   : > { %v856_v45 = vunpack.i.h.bf16 %v854_v43  ;;  %v855_v46 = vunpack.i.l.bf16 %v854_v43 }
 0x199   : > { %v564_v55 = vpop.permute.xlu1 %563 }
 0x19a   : > { %792 = vmatpush1.bf16.msra.mxu0 %v791_v47  ;;  %v517_v49 = vsel %vm515_vm0, %v855_v46, %v856_v45  ;;  %v516_v51 = vsel %vm515_vm0, %v510_v34, %v855_v46 }
 0x19b   : > { %v562_v52 = vpop.permute.xlu0 %561  ;;  %v793_v53 = vpack.c.bf16 %v536_v50, %v517_v49  ;;  %v795_v54 = vpack.c.bf16 %v535_v48, %v516_v51 }
 0x19c   : > { %v567_v56 = vsel %vm565_vm1, %v562_v52, %v564_v55 }
 0x19d   : > { %794 = vmatprep.subr.bf16.mxu0 %v793_v53 }
 0x19e   : > { %796 = vmatpush1.bf16.msra.mxu0 %v795_v54 }
 0x19f   : > { %v560_v57 = vpop.permute.xlu0 %559  ;;  %611 = vmatprep.subr.mxu0 %v567_v56 }
 0x1a0   : > { %v566_v58 = vsel %vm565_vm1, %v560_v57, %v562_v52 }
 0x1a2   : > { %612 = vmatpush1.msra.mxu0 %v566_v58 }
 0x1a3   : > { %776 = vmatmul.mubr.msk.f32.vlgmr.msra.gmra.mrb[0].mxu0 %vm591_vm2, %v572_v59 }
 0x276   : > { %v661_v60 = vpop.f32.mrb[0].mxu0 }
 0x277   : > { %v663_v61 = vpop.f32.mrb[1].mxu0  ;;  %678 = vst [vmem:[%s285_s12] sm:$0xff] %v661_v60  ;;  %v671_v62 = vmul.f32 %v661_v60, %v661_v60 }
 0x278   : > { %v672_v63 = vmul.f32 %v663_v61, %v663_v61  ;;  %679 = vst [vmem:[%s285_s12 + $0x8] sm:$0xff] %v663_v61  ;;  %v666_v0 = vadd.f32 %v663_v61, %v661_v60 }
 0x27a   : > { %667 = vadd.xlane.f32.xlu1 %v666_v0  ;;  %v673_v1 = vadd.f32 %v672_v63, %v671_v62 }
 0x27c   : > { %674 = vadd.xlane.f32.xlu0 %v673_v1 }
 0x307   : > { %v668_v2 = vpop.xlane.xlu1 %667 }
 0x308   : > { %670 = vst.msk [vmem:[%s289_s17] sm:$0xff] %vm669_vm3, %v668_v2 }
 0x309   : > { %v675_v3 = vpop.xlane.xlu0 %674 }
 0x30a   : > { %677 = vst.msk [vmem:[%s289_s17] sm:$0xff] %vm676_vm4, %v675_v3 }
 0x30b PF: > { %s18_s24 = sadd.s32 1, %s863_s24  }
 0x30c   : > { %p15_p4 = scmp.ge.s32.totalorder %s18_s24, 4  }
 0x30e   :  { %17 = sbr.rel (!%p15_p4) target bundleno = 1 (0x1), region = 86 }

// kernel: double_conv.3
= control target key start
LH: loop header
LB: loop body
LE: loop exit
PB: predicated region body
PF: predicated region fallthrough
CT: control target
= control target key end

     0   :  { %s775_s18 = smov 0   ;;  %s850_s0 = inlined_call_operand.vmem [shape: f32[2,4,256], index: 0, kind: input, shape index: {}]   ;;  %s851_s1 = inlined_call_operand.vmem [shape: f32[8,36], index: 1, kind: input, shape index: {}]   ;;  %s852_s2 = inlined_call_operand.vmem [shape: f32[1,256], index: 2, kind: input, shape index: {}]   ;;  %s853_s3 = inlined_call_operand.vmem [shape: f32[1,256], index: 3, kind: input, shape index: {}]   ;;  %s854_s4 = inlined_call_operand.vmem [shape: f32[2,8,256], index: 4, kind: output, shape index: {0}]   ;;  %s855_s5 = inlined_call_operand.vmem [shape: f32[2,8,2], index: 5, kind: output, shape index: {1}]  }
   0x1 LB: > { %s670_s19 = sadd.s32 4294967295, %s728_s18   ;;  %p674_p0 = scmp.ge.s32.totalorder %s728_s18, 1  ;;  %s728_s18 = sphi %s775_s18, %s16_s18  }
   0x2   : > { %p190_p1 = scmp.lt.s32.totalorder %s728_s18, 3 }
   0x4   : > { %p191_p2 = pnand %p674_p0, %p190_p1 }
   0x5   : > { %p222_p3 = scmp.lt.s32.totalorder (!%p191_p2), %s670_s19, 1  ;;  %v258_v0 = vlaneseq (!%p191_p2)  ;;  %vm239_vm0 = vcmask (!%p191_p2), 134144   ;;  %vm241_vm1 = vcmask (!%p191_p2), 273544   ;;  %v730_v2 = vmov (!%p191_p2), 0.0   ;;  %v237_v3 = vld [vmem:[%s852_s2] sm:$0x3] (!%p191_p2) }
   0x6   : > { %194 = sbr.rel (%p191_p2) target bundleno = 673 (0x2a1), region = 36  ;;  %240 = vst.msk [vmem:[#allocation2] sm:$0xf] (!%p191_p2), %vm239_vm0, %v730_v2  ;;  %563 = vmatprep.mubr.f32.mxu0 (!%p191_p2), %v730_v2  ;;  %v238_v4 = vld [vmem:[%s853_s3] sm:$0x3] (!%p191_p2)  ;;  %s731_s28 = smov (!%p191_p2), 17  }
   0x7   : > { %v259_v1 = vshrl.u32 (!%p191_p2), %v258_v0, 7  ;;  %242 = vst.msk [vmem:[#allocation2 + $0x8] sm:$0xf] (!%p191_p2), %vm241_vm1, %v730_v2  ;;  %s732_s29 = smov (!%p191_p2), 16   ;;  %s733_s30 = smov (!%p191_p2), 2   ;;  %vm251_vm2 = vcmask (!%p191_p2), 1043592  }
   0x8   : > { %s734_s6 = smov (!%p191_p2), 32   ;;  %s735_s7 = smov (!%p191_p2), 18   ;;  %vm252_vm3 = vcmask (!%p191_p2), 1047556   ;;  %vm247_vm4 = vcmask (!%p191_p2), 138240   ;;  %vm308_vm6 = vcmask (!%p191_p2), 15360   ;;  %vm335_vm7 = vcmask (!%p191_p2), 130048  }
   0x9   : > { %v260_v5 = vsub.s32 (!%p191_p2), 0, %v259_v1  ;;  %v264_v6 = vsub.s32 (!%p191_p2), 1, %v259_v1  ;;  %s736_s8 = smov (!%p191_p2), 34   ;;  %vm253_vm5 = vmor (!%p191_p2), %vm252_vm3, %vm251_vm2  ;;  %s737_s9 = smov (!%p191_p2), 95   ;;  %vm381_vm8 = vcmask (!%p191_p2), 146432   ;;  %vm409_vm9 = vcmask (!%p191_p2), 261120  }
   0xa   : > { %s738_s10 = smov (!%p191_p2), 111   ;;  %s739_s11 = smov (!%p191_p2), 127   ;;  %vm455_vm10 = vcmask (!%p191_p2), 277504   ;;  %vm286_vm11 = vcmask (!%p191_p2), 1039360   ;;  %vm443_vm12 = vcmask (!%p191_p2), 777216   ;;  %vm369_vm13 = vcmask (!%p191_p2), 908288  }
   0xb   : > { %v261_v8 = vrot.slane (!%p191_p2), %v237_v3, %v260_v5  ;;  %v265_v9 = vrot.slane (!%p191_p2), %v237_v3, %v264_v6  ;;  %v299_v10 = vrot.slane (!%p191_p2), %v238_v4, %v260_v5  ;;  %v303_v11 = vrot.slane (!%p191_p2), %v238_v4, %v264_v6  ;;  %s740_s12 = smov (!%p191_p2), 96   ;;  %s741_s13 = smov (!%p191_p2), 126  }
   0xc   : > { %s742_s14 = smov (!%p191_p2), 112   ;;  %s743_s15 = smov (!%p191_p2), 110   ;;  %vm397_vm14 = vcmask (!%p191_p2), 900096   ;;  %vm323_vm15 = vcmask (!%p191_p2), 1031168   ;;  %vm424_vm1 = vcmask (!%p191_p2), 785408   ;;  %vm470_vm2 = vcmask (!%p191_p2), 769024  }
   0xd   : > { %s857_s19 = smov (!%p222_p3, %s670_s19), 1  ;;  %v266_v12 = vcombine.low %v261_v8, %v265_v9  ;;  %v304_v13 = vcombine.low %v299_v10, %v303_v11  ;;  %s744_s16 = smov 94   ;;  %vm492_vm3 = vcmask 1043456  }
   0xe   : > { %s685_s24 = sshll.u32 %s857_s19, 3  ;;  %s686_s21 = sshll.u32 %s857_s19, 4 }
   0xf   : > { %s226_s27 = scalar_lea.vmem %s850_s0, %s685_s24  ;;  %332 = vrot.lane.b32.xlu1 %v266_v12, %s732_s29  ;;  %s231_s25 = scalar_lea.vmem %s854_s4, %s686_s21 }
  0x10   : > { %v236_v7 = vld [vmem:[%s226_s27] sm:$0xff] }
  0x11   : > { %244 = vrot.lane.b32.xlu0 %v236_v7, %s731_s28  ;;  %s235_s28 = scalar_lea.vmem %s855_s5, %s685_s24 }
  0x13   : > { %406 = vrot.lane.b32.xlu1 %v266_v12, %s734_s6 }
  0x15   : > { %305 = vrot.lane.b32.xlu0 %v304_v13, %s733_s30 }
  0x17   : > { %452 = vrot.lane.b32.xlu1 %v304_v13, %s736_s8 }
  0x19   : > { %378 = vrot.lane.b32.xlu0 %v304_v13, %s735_s7 }
  0x81   : > { %v333_v17 = vpop.permute.xlu1 %332 }
  0x82   : > { %v334_v30 = vrot.slane %v333_v17, 4 }
  0x83   : > { %v245_v14 = vpop.permute.xlu0 %244 }
  0x84   : > { %v246_v15 = vrot.slane %v245_v14, 4  ;;  %v336_v34 = vsel %vm335_vm7, %v334_v30, %v333_v17 }
  0x85   : > { %v407_v19 = vpop.permute.xlu1 %406 }
  0x86   : > { %v248_v16 = vsel %vm247_vm4, %v246_v15, %v245_v14  ;;  %255 = vst.msk [vmem:[#allocation2 + $0x8] sm:$0xf] %vm239_vm0, %v246_v15  ;;  %v408_v21 = vrot.slane %v407_v19, 4  ;;  %vm351_vm0 = vcmask 916480   ;;  %vm488_vm4 = vcmask 293888  }
  0x87   : > { %254 = vst.msk [vmem:[#allocation2] sm:$0xff] %vm253_vm5, %v248_v16  ;;  %v306_v24 = vpop.permute.xlu0 %305  ;;  %vm573_vm5 = vcmask 7168  }
  0x88   : > { %v307_v25 = vrot.slane %v306_v24, 4  ;;  %v410_v46 = vsel %vm409_vm9, %v408_v21, %v407_v19 }
  0x89   : > { %v453_v48 = vpop.permute.xlu1 %452 }
  0x8a   : > { %v309_v32 = vsel %vm308_vm6, %v307_v25, %v306_v24  ;;  %v454_v51 = vrot.slane %v453_v48, 4  ;;  %vm580_vm6 = vcmask 15368  }
  0x8b   : > { %v379_v35 = vpop.permute.xlu0 %378 }
  0x8c   : > { %v380_v38 = vrot.slane %v379_v35, 4  ;;  %v456_v54 = vsel %vm455_vm10, %v454_v51, %v453_v48 }
  0x8d   : > { %v359_v20 = vld [vmem:[#allocation2 + $0x8] sm:$0xf] }
  0x8e   : > { %v799_v18 = vld [vmem:[#allocation2] sm:$0xff]  ;;  %367 = vrot.lane.b32.xlu0 %v359_v20, %s738_s10  ;;  %v405_v22 = vld [vmem:[#allocation2 + $0x8] sm:$0xf]  ;;  %v382_v41 = vsel %vm381_vm8, %v380_v38, %v379_v35 }
  0x8f   : > { %439 = vrot.lane.b32.xlu1 %v799_v18, %s737_s9  ;;  %v268_v23 = vmul.f32 %v266_v12, %v799_v18  ;;  %v720_v26 = vld [vmem:[#allocation2 + $0x8] ss:$0 sps:$4 sm:$0xff]   ;;  %v414_v29 = vmul.f32 %v408_v21, %v405_v22  ;;  %v312_v36 = vmul.f32 %v309_v32, %v799_v18  ;;  %v339_v37 = vmul.f32 %v336_v34, %v799_v18 }
  0x90   : > { %v294_v28 = vld [vmem:[#allocation2 + $0x8] sm:$0xf]  ;;  %v362_v40 = vcombine.high %v799_v18, %v799_v18  ;;  %v435_v43 = vcombine.low %v799_v18, %v799_v18  ;;  %v385_v44 = vmul.f32 %v382_v41, %v799_v18  ;;  %v413_v50 = vmul.f32 %v410_v46, %v799_v18 }
  0x91   : > { %v270_v27 = vcombine.high %v268_v23, %v268_v23  ;;  %272 = vst [vmem:[#allocation3] sm:$0xf] %v268_v23  ;;  %v313_v31 = vmul.f32 %v307_v25, %v294_v28  ;;  %v721_v33 = vld [vmem:[#allocation2 + $0x8] ss:$0 sps:$4 sm:$0xff]   ;;  %v316_v52 = vcombine.high %v312_v36, %v312_v36  ;;  %v343_v55 = vcombine.low %v339_v37, %v339_v37 }
  0x92   : > { %282 = vrot.lane.b32.xlu0 %v799_v18, %s739_s11  ;;  %v377_v39 = vld [vmem:[#allocation2 + $0x8] sm:$0xf]  ;;  %v459_v56 = vmul.f32 %v456_v54, %v799_v18  ;;  %v417_v57 = vcombine.high %v413_v50, %v413_v50  ;;  %v389_v58 = vcombine.low %v385_v44, %v385_v44 }
  0x93   : > { %363 = vrot.lane.b32.xlu1 %v799_v18, %s738_s10  ;;  %273 = vst [vmem:[#allocation3 + $0x8] sm:$0xf] %v270_v27  ;;  %v386_v42 = vmul.f32 %v380_v38, %v377_v39  ;;  %v331_v45 = vld [vmem:[#allocation2 + $0x8] sm:$0xf] }
  0x94   : > { %v340_v49 = vmul.f32 %v334_v30, %v331_v45  ;;  %v463_v59 = vcombine.high %v459_v56, %v459_v56  ;;  %v451_v60 = vld [vmem:[#allocation2 + $0x8] sm:$0xf] }
  0x95   : > { %v390_v47 = vcombine.low %v386_v42, %v386_v42  ;;  %v460_v61 = vmul.f32 %v454_v51, %v451_v60 }
  0x96   : > { %422 = vrot.lane.b32.xlu0 %v414_v29, %s740_s12  ;;  %v344_v53 = vcombine.low %v340_v49, %v340_v49 }
  0x97   : > { %284 = vrot.lane.b32.xlu1 %v720_v26, %s739_s11 }
  0x9a   : > { %441 = vrot.lane.b32.xlu0 %v721_v33, %s737_s9 }
  0x9b   : > { %321 = vrot.lane.b32.xlu1 %v313_v31, %s741_s13 }
  0x9e   : > { %347 = vrot.lane.b32.xlu0 %v339_v37, %s742_s14 }
  0x9f   : > { %317 = vrot.lane.b32.xlu1 %v312_v36, %s741_s13 }
  0xa2   : > { %280 = vrot.lane.b32.xlu0 %v435_v43, %s739_s11 }
  0xa3   : > { %365 = vrot.lane.b32.xlu1 %v362_v40, %s738_s10 }
  0xa6   : > { %395 = vrot.lane.b32.xlu0 %v390_v47, %s743_s15 }
  0xa7   : > { %393 = vrot.lane.b32.xlu1 %v385_v44, %s743_s15 }
  0xaa   : > { %319 = vrot.lane.b32.xlu0 %v316_v52, %s741_s13  ;;  %v477_v52 = vld [vmem:[%s851_s1] sm:$0xff] }
  0xab   : > { %418 = vrot.lane.b32.xlu1 %v413_v50, %s740_s12 }
  0xae   : > { %345 = vrot.lane.b32.xlu0 %v343_v55, %s742_s14 }
  0xaf   : > { %349 = vrot.lane.b32.xlu1 %v344_v53, %s742_s14 }
  0xb2   : > { %391 = vrot.lane.b32.xlu0 %v389_v58, %s743_s15 }
  0xb3   : > { %420 = vrot.lane.b32.xlu1 %v417_v57, %s740_s12 }
  0xb6   : > { %437 = vrot.lane.b32.xlu0 %v435_v43, %s737_s9 }
  0xb7   : > { %466 = vrot.lane.b32.xlu1 %v463_v59, %s744_s16 }
  0xba   : > { %468 = vrot.lane.b32.xlu0 %v460_v61, %s744_s16 }
  0xbb   : > { %464 = vrot.lane.b32.xlu1 %v459_v56, %s744_s16 }
 0x100   : > { %v368_v63 = vpop.permute.xlu0 %367 }
 0x101   : > { %v440_v62 = vpop.permute.xlu1 %439 }
 0x104   : > { %v283_v1 = vpop.permute.xlu0 %282 }
 0x105   : > { %v364_v0 = vpop.permute.xlu1 %363 }
 0x108   : > { %v423_v3 = vpop.permute.xlu0 %422 }
 0x109   : > { %v285_v2 = vpop.permute.xlu1 %284 }
 0x10a   : > { %v288_v4 = vsel %vm286_vm11, %v283_v1, %v285_v2 }
 0x10b   : > { %292 = vst [vmem:[#allocation3 + $0x8] sm:$0xf0] %v288_v4 }
 0x10c   : > { %v442_v6 = vpop.permute.xlu0 %441 }
 0x10d   : > { %v322_v5 = vpop.permute.xlu1 %321  ;;  %v445_v7 = vsel %vm443_vm12, %v440_v62, %v442_v6 }
 0x10e   : > { %449 = vst [vmem:[#allocation3 + $0x38] sm:$0xf0] %v445_v7 }
 0x110   : > { %v348_v9 = vpop.permute.xlu0 %347 }
 0x111   : > { %v318_v8 = vpop.permute.xlu1 %317 }
 0x112   : > { %v479_v33 = vld [vmem:[#allocation3 + $0x8] sm:$0xff] }
 0x114   : > { %v281_v11 = vpop.permute.xlu0 %280 }
 0x115   : > { %v366_v10 = vpop.permute.xlu1 %365  ;;  %v287_v14 = vsel %vm286_vm11, %v281_v11, %v283_v1 }
 0x116   : > { %v370_v12 = vsel %vm369_vm13, %v364_v0, %v366_v10  ;;  %v371_v13 = vsel %vm369_vm13, %v366_v10, %v368_v63  ;;  %291 = vst [vmem:[#allocation3] sm:$0xf0] %v287_v14 }
 0x117   : > { %374 = vst [vmem:[#allocation3 + $0x20] sm:$0xf] %v370_v12  ;;  %375 = vst [vmem:[#allocation3 + $0x28] sm:$0xf] %v371_v13 }
 0x118   : > { %v396_v16 = vpop.permute.xlu0 %395 }
 0x119   : > { %v394_v15 = vpop.permute.xlu1 %393 }
 0x11a   : > { %v399_v17 = vsel %vm397_vm14, %v394_v15, %v396_v16 }
 0x11b   : > { %403 = vst [vmem:[#allocation3 + $0x28] sm:$0xf0] %v399_v17 }
 0x11c   : > { %v320_v19 = vpop.permute.xlu0 %319 }
 0x11d   : > { %v419_v18 = vpop.permute.xlu1 %418  ;;  %v324_v20 = vsel %vm323_vm15, %v318_v8, %v320_v19  ;;  %v325_v21 = vsel %vm323_vm15, %v320_v19, %v322_v5  ;;  %v478_v37 = vld [vmem:[#allocation3] sm:$0xff] }
 0x11e   : > { %328 = vst [vmem:[#allocation3 + $0x10] sm:$0xf] %v324_v20  ;;  %329 = vst [vmem:[#allocation3 + $0x18] sm:$0xf] %v325_v21 }
 0x120   : > { %v346_v23 = vpop.permute.xlu0 %345 }
 0x121   : > { %v350_v22 = vpop.permute.xlu1 %349  ;;  %v352_v25 = vsel %vm351_vm0, %v346_v23, %v348_v9 }
 0x122   : > { %v353_v24 = vsel %vm351_vm0, %v348_v9, %v350_v22  ;;  %356 = vst [vmem:[#allocation3 + $0x10] sm:$0xf0] %v352_v25  ;;  %v483_v43 = vld [vmem:[#allocation3 + $0x28] sm:$0xff] }
 0x123   : > { %357 = vst [vmem:[#allocation3 + $0x18] sm:$0xf0] %v353_v24 }
 0x124   : > { %v392_v27 = vpop.permute.xlu0 %391 }
 0x125   : > { %v421_v26 = vpop.permute.xlu1 %420  ;;  %v398_v30 = vsel %vm397_vm14, %v392_v27, %v394_v15 }
 0x126   : > { %v425_v28 = vsel %vm424_vm1, %v419_v18, %v421_v26  ;;  %v426_v29 = vsel %vm424_vm1, %v421_v26, %v423_v3  ;;  %402 = vst [vmem:[#allocation3 + $0x20] sm:$0xf0] %v398_v30 }
 0x127   : > { %429 = vst [vmem:[#allocation3 + $0x30] sm:$0xf] %v425_v28  ;;  %430 = vst [vmem:[#allocation3 + $0x38] sm:$0xf] %v426_v29 }
 0x128   : > { %v438_v32 = vpop.permute.xlu0 %437 }
 0x129   : > { %v467_v31 = vpop.permute.xlu1 %466  ;;  %v444_v35 = vsel %vm443_vm12, %v438_v32, %v440_v62  ;;  %v480_v38 = vld [vmem:[#allocation3 + $0x10] sm:$0xff] }
 0x12a   : > { %v481_v34 = vld [vmem:[#allocation3 + $0x18] sm:$0xff]  ;;  %448 = vst [vmem:[#allocation3 + $0x30] sm:$0xf0] %v444_v35  ;;  %v689_v39 = vpack.c.bf16 %v480_v38, %v478_v37 }
 0x12b   : > { %v687_v36 = vpack.c.bf16 %v481_v34, %v479_v33 }
 0x12c   : > { %v469_v41 = vpop.permute.xlu0 %468 }
 0x12d   : > { %v465_v40 = vpop.permute.xlu1 %464  ;;  %688 = vmatprep.subr.bf16.mxu0 %v687_v36  ;;  %v472_v45 = vsel %vm470_vm2, %v467_v31, %v469_v41  ;;  %v482_v47 = vld [vmem:[#allocation3 + $0x20] sm:$0xff] }
 0x12e   : > { %v471_v42 = vsel %vm470_vm2, %v465_v40, %v467_v31  ;;  %690 = vmatpush1.bf16.msra.mxu0 %v689_v39  ;;  %v485_v44 = vld [vmem:[#allocation3 + $0x38] sm:$0xff]  ;;  %476 = vst [vmem:[#allocation3 + $0x48] sm:$0xf] %v472_v45 }
 0x12f   : > { %475 = vst [vmem:[#allocation3 + $0x40] sm:$0xf] %v471_v42  ;;  %v691_v46 = vpack.c.bf16 %v485_v44, %v483_v43 }
 0x131   : > { %692 = vmatprep.subr.bf16.mxu0 %v691_v46  ;;  %v484_v48 = vld [vmem:[#allocation3 + $0x30] sm:$0xff] }
 0x132   : > { %v693_v49 = vpack.c.bf16 %v484_v48, %v482_v47 }
 0x134   : > { %694 = vmatpush1.bf16.msra.mxu0 %v693_v49 }
 0x135   : > { %v487_v50 = vld [vmem:[#allocation3 + $0x48] sm:$0xf] }
 0x136   : > { %v486_v51 = vld [vmem:[#allocation3 + $0x40] sm:$0xf]  ;;  %680 = vmatprep.subr.msk.mxu0 %vm492_vm3, %v487_v50 }
 0x138   : > { %681 = vmatpush1.msk.msra.mxu0 %vm492_vm3, %v486_v51 }
 0x139   : > { %682 = vmatmul.mubr.msk.f32.vlgmr.msra.gmra.mrb[0].mxu0 %vm488_vm4, %v477_v52 }
 0x20c   : > { %v565_v53 = vpop.f32.mrb[0].mxu0 }
 0x20d   : > { %v567_v54 = vpop.f32.mrb[1].mxu0  ;;  %582 = vst [vmem:[%s231_s25] sm:$0xff] %v565_v53  ;;  %v575_v55 = vmul.f32 %v565_v53, %v565_v53 }
 0x20e   : > { %v576_v56 = vmul.f32 %v567_v54, %v567_v54  ;;  %583 = vst [vmem:[%s231_s25 + $0x8] sm:$0xff] %v567_v54  ;;  %v570_v57 = vadd.f32 %v567_v54, %v565_v53 }
 0x210   : > { %571 = vadd.xlane.f32.xlu0 %v570_v57  ;;  %v577_v58 = vadd.f32 %v576_v56, %v575_v55 }
 0x212   : > { %578 = vadd.xlane.f32.xlu1 %v577_v58 }
 0x29d   : > { %v572_v59 = vpop.xlane.xlu0 %571 }
 0x29e   : > { %574 = vst.msk [vmem:[%s235_s28] sm:$0xff] %vm573_vm5, %v572_v59 }
 0x29f   : > { %v579_v60 = vpop.xlane.xlu1 %578 }
 0x2a0   : > { %581 = vst.msk [vmem:[%s235_s28] sm:$0xff] %vm580_vm6, %v579_v60 }
 0x2a1 PF: > { %s16_s18 = sadd.s32 1, %s728_s18  }
 0x2a2   : > { %p13_p4 = scmp.ge.s32.totalorder %s16_s18, 4  }
 0x2a4   :  { %15 = sbr.rel (!%p13_p4) target bundleno = 1 (0x1), region = 78 }

</bundles_post_ra>
